<compile_context>
chip_gen: v6e
topology: v6e:2x2x1
jax: 0.10.0
libtpu: 0.0.40
codegen_flags: <defaults>
</compile_context>

<pallas_src>
import jax
import jax.numpy as jnp
from jax import lax
from jax.experimental import pallas as pl
from jax.experimental.pallas import tpu as pltpu

LANES = 128
CHUNK_ROWS = 512                       # rows per in-kernel accumulation chunk
TARGET_BLOCK_BYTES = 2 * 1024 * 1024   # ~2 MiB HBM per input per grid step


def _round_up(x, m):
    return ((x + m - 1) // m) * m


def _sublane_multiple(dtype):
    # f32 -> 8, bf16/f16 -> 16, int8/fp8 -> 32 rows (sub-32-bit sublane packing).
    isz = jnp.dtype(dtype).itemsize
    return max(8, 8 * (4 // max(isz, 1)))


def _num_tensorcores():
    # The 2-way "parallel" split only pays off on 2-TensorCore chips (v7x);
    # on single-TC v5e/v6e it just adds a duplicated clamped-block re-read.
    try:
        kind = jax.devices()[0].device_kind.lower()
    except Exception:
        return 1
    return 2 if "v7" in kind else 1


def _make_iou_kernel(tile_rows, chunk_rows, blocks_per_core, num_blocks,
                     rows_valid, has_ragged, has_dup):
    """Build the reduction kernel with static tiling constants baked in."""
    n_chunks = tile_rows // chunk_rows

    def kernel(pred_ref, targ_ref, inter_ref, total_ref, acc_i, acc_t):
        c = pl.program_id(0)   # partial / core index       ("parallel")
        i = pl.program_id(1)   # block index within partial ("arbitrary")

        @pl.when(i == 0)
        def _():
            acc_i[...] = jnp.zeros_like(acc_i)
            acc_t[...] = jnp.zeros_like(acc_t)

        b = c * blocks_per_core + i       # logical (unclamped) block index
        row0 = b * tile_rows              # first global row of this block

        def accumulate(masked):
            # Chunked in-place accumulate: VMEM intermediates stay bounded at
            # ~chunk_rows x 128 regardless of tile size; per-step partial sums
            # stay vreg-shaped (8, 128) so the hot path is pure VPU mul/add.
            def chunk_body(j, carry):
                r0 = j * chunk_rows
                if not isinstance(j, int):
                    r0 = pl.multiple_of(r0, chunk_rows)
                p = pred_ref[pl.ds(r0, chunk_rows), :].astype(jnp.float32)
                t = targ_ref[pl.ds(r0, chunk_rows), :].astype(jnp.float32)
                if masked:
                    rid = row0 + r0 + lax.broadcasted_iota(
                        jnp.int32, (chunk_rows, LANES), 0)
                    valid = rid < rows_valid
                    p = jnp.where(valid, p, 0.0)
                    t = jnp.where(valid, t, 0.0)
                acc_i[...] += (p * t).reshape(-1, 8, LANES).sum(axis=0)
                acc_t[...] += (p + t).reshape(-1, 8, LANES).sum(axis=0)
                return carry

            if n_chunks == 1:
                chunk_body(0, 0)
            else:
                lax.fori_loop(0, n_chunks, chunk_body, 0,
                              unroll=min(n_chunks, 8))

        # Gate the masked path: only the ragged last real block pays the
        # iota/compare/select cost; duplicated (clamped) blocks of the last
        # partial are skipped entirely; interior blocks take the fast path.
        if has_ragged and has_dup:
            is_dup = b >= num_blocks
            is_ragged_blk = b == (num_blocks - 1)

            @pl.when(jnp.logical_not(jnp.logical_or(is_dup, is_ragged_blk)))
            def _():
                accumulate(masked=False)

            @pl.when(is_ragged_blk)
            def _():
                accumulate(masked=True)

        elif has_ragged:
            is_ragged_blk = b == (num_blocks - 1)

            @pl.when(jnp.logical_not(is_ragged_blk))
            def _():
                accumulate(masked=False)

            @pl.when(is_ragged_blk)
            def _():
                accumulate(masked=True)

        elif has_dup:
            @pl.when(b < num_blocks)
            def _():
                accumulate(masked=False)

        else:
            accumulate(masked=False)

        @pl.when(i == pl.num_programs(1) - 1)
        def _():
            # Single cross-lane/sublane (XLU) reduce per partial.
            inter_ref[...] = jnp.sum(acc_i[...]).reshape(1, 1, 1)
            total_ref[...] = jnp.sum(acc_t[...]).reshape(1, 1, 1)

    return kernel


def _iou_partial_sums(p2, t2):
    """sum(p*t) and sum(p+t) over a (rows, 128) layout via a Pallas reduction."""
    rows = p2.shape[0]
    itemsize = max(jnp.dtype(p2.dtype).itemsize, jnp.dtype(t2.dtype).itemsize)
    mult = max(_sublane_multiple(p2.dtype), _sublane_multiple(t2.dtype))

    # Block sizing: ~TARGET_BLOCK_BYTES per input per step (more rows for
    # narrower dtypes keeps bytes/step constant); never larger than the array
    # except for tiny inputs, and always a multiple of the sublane packing.
    cap_rows = max(_round_up(TARGET_BLOCK_BYTES // (LANES * itemsize),
                             CHUNK_ROWS), CHUNK_ROWS)
    if rows >= cap_rows:
        tile_rows, chunk_rows = cap_rows, CHUNK_ROWS
    elif rows >= CHUNK_ROWS:
        tile_rows, chunk_rows = (rows // CHUNK_ROWS) * CHUNK_ROWS, CHUNK_ROWS
    else:
        tile_rows = _round_up(rows, mult)
        chunk_rows = tile_rows
        if tile_rows > rows:
            # Tiny inputs only (< CHUNK_ROWS rows): zero-pad a handful of rows
            # so the block never exceeds the array; zeros add nothing to the
            # sums, so no in-kernel masking is needed for them.
            p2 = jnp.pad(p2, ((0, tile_rows - rows), (0, 0)))
            t2 = jnp.pad(t2, ((0, tile_rows - rows), (0, 0)))
            rows = tile_rows

    num_blocks = pl.cdiv(rows, tile_rows)
    num_partials = max(1, min(_num_tensorcores(), num_blocks))
    blocks_per_core = pl.cdiv(num_blocks, num_partials)
    total_steps = num_partials * blocks_per_core
    has_ragged = (rows % tile_rows) != 0
    has_dup = total_steps > num_blocks

    def block_map(c, i):
        # Clamp so duplicated steps of the last partial never index past the
        # array; those steps are fully skipped inside the kernel.
        return (jnp.minimum(c * blocks_per_core + i, num_blocks - 1), 0)

    kernel = _make_iou_kernel(tile_rows, chunk_rows, blocks_per_core,
                              num_blocks, rows, has_ragged, has_dup)

    # 3-deep input pipelining only on 2-TC chips (v7x); depth 2 elsewhere.
    buffered = getattr(pl, "Buffered", None)
    use_triple = (num_partials >= 2) and (buffered is not None)
    n_bufs = 3 if use_triple else 2

    def make_in_spec():
        if use_triple:
            return pl.BlockSpec((tile_rows, LANES), block_map,
                                pipeline_mode=buffered(3))
        return pl.BlockSpec((tile_rows, LANES), block_map)

    block_bytes = tile_rows * LANES * (
        jnp.dtype(p2.dtype).itemsize + jnp.dtype(t2.dtype).itemsize)
    # Explicit VMEM budget: pipeline buffers + chunk temporaries + headroom,
    # kept inside v7x's 32 MiB default scoped VMEM (64 MiB physical).
    vmem_limit = int(min(max(n_bufs * block_bytes + (8 << 20), 16 << 20),
                         32 << 20))

    inter_p, total_p = pl.pallas_call(
        kernel,
        out_shape=(
            jax.ShapeDtypeStruct((num_partials, 1, 1), jnp.float32),
            jax.ShapeDtypeStruct((num_partials, 1, 1), jnp.float32),
        ),
        grid_spec=pltpu.PrefetchScalarGridSpec(
            num_scalar_prefetch=0,
            grid=(num_partials, blocks_per_core),
            in_specs=[make_in_spec(), make_in_spec()],
            out_specs=[
                pl.BlockSpec((1, 1, 1), lambda c, i: (c, 0, 0)),
                pl.BlockSpec((1, 1, 1), lambda c, i: (c, 0, 0)),
            ],
            scratch_shapes=[
                pltpu.VMEM((8, LANES), jnp.float32),
                pltpu.VMEM((8, LANES), jnp.float32),
            ],
        ),
        compiler_params=pltpu.CompilerParams(
            dimension_semantics=("parallel", "arbitrary"),
            vmem_limit_bytes=vmem_limit,
        ),
    )(p2, t2)

    return jnp.sum(inter_p), jnp.sum(total_p)


@jax.jit
def iou_loss(pred, targets, smooth=1.0):
    """Pallas TPU implementation of IoULoss.forward: 1 - (I + s) / (U + s)."""
    p_flat = jnp.ravel(pred)
    t_flat = jnp.ravel(targets)
    n = p_flat.shape[0]
    rows = n // LANES
    main = rows * LANES
    rem = n - main

    intersection = jnp.zeros((), jnp.float32)
    total = jnp.zeros((), jnp.float32)

    if rows > 0:
        if rem == 0:
            p2 = p_flat.reshape(rows, LANES)      # free row-major reshape
            t2 = t_flat.reshape(rows, LANES)
        else:
            # Kernel reduces the leading multiple-of-128 prefix; the <128
            # element tail is folded in with plain jnp below — no whole-array
            # pad / extra HBM pass.
            p2 = p_flat[:main].reshape(rows, LANES)
            t2 = t_flat[:main].reshape(rows, LANES)
        inter_k, total_k = _iou_partial_sums(p2, t2)
        intersection = intersection + inter_k
        total = total + total_k

    if rem > 0:
        p_tail = p_flat[main:].astype(jnp.float32)
        t_tail = t_flat[main:].astype(jnp.float32)
        intersection = intersection + jnp.sum(p_tail * t_tail)
        total = total + jnp.sum(p_tail + t_tail)

    smooth = jnp.asarray(smooth, jnp.float32)
    union = total - intersection
    iou = (intersection + smooth) / (union + smooth)
    return 1.0 - iou


def iou_loss_ref(pred, targets, smooth=1.0):
    p = jnp.ravel(pred).astype(jnp.float32)
    t = jnp.ravel(targets).astype(jnp.float32)
    intersection = jnp.sum(p * t)
    total = jnp.sum(p + t)
    union = total - intersection
    return 1.0 - (intersection + smooth) / (union + smooth)


if __name__ == "__main__":
    key = jax.random.PRNGKey(0)
    k1, k2 = jax.random.split(key)
    # NCHW inputs: sigmoid-ish predictions and binary targets.
    x_shape = (2, 4, 16, 16)
    pred = jax.nn.sigmoid(jax.random.normal(k1, x_shape, dtype=jnp.float32))
    targets = (jax.random.uniform(k2, x_shape) > 0.5).astype(jnp.float32)

    loss = iou_loss(pred, targets)
    loss = jax.block_until_ready(loss)

    ref = iou_loss_ref(pred, targets)
    assert jnp.allclose(loss, ref, atol=1e-5, rtol=1e-5), (loss, ref)
    print("KERNEL_OK")
</pallas_src>

<mosaic_0001>
module attributes {stable_mosaic.version = 11 : i64} {
  func.func @kernel(%arg0: i32, %arg1: i32, %arg2: memref<16x128xf32, #tpu.memory_space<vmem>>, %arg3: memref<16x128xf32, #tpu.memory_space<vmem>>, %arg4: memref<1x1x1xf32, #tpu.memory_space<vmem>>, %arg5: memref<1x1x1xf32, #tpu.memory_space<vmem>>, %arg6: memref<8x128xf32, #tpu.memory_space<vmem>>, %arg7: memref<8x128xf32, #tpu.memory_space<vmem>>) attributes {dimension_semantics = [#tpu.dimension_semantics<parallel>, #tpu.dimension_semantics<arbitrary>], iteration_bounds = array<i64: 1, 1>, scalar_prefetch = 0 : i64, scratch_operands = 2 : i64, tpu.core_type = #tpu.core_type<tc>, window_params = [{transform_indices = @transform_0, window_bounds = array<i64: 16, 128>}, {transform_indices = @transform_1, window_bounds = array<i64: 16, 128>}, {transform_indices = @transform_2, window_bounds = array<i64: 1, 1, 1>}, {transform_indices = @transform_3, window_bounds = array<i64: 1, 1, 1>}]} {
    %c0_i32 = arith.constant 0 : i32
    %0 = arith.cmpi eq, %arg1, %c0_i32 : i32
    %1 = arith.extui %0 : i1 to i32
    %c0_i32_0 = arith.constant 0 : i32
    %2 = arith.cmpi ne, %1, %c0_i32_0 : i32
    scf.if %2 {
      %cst_15 = arith.constant 0.000000e+00 : f32
      %20 = vector.broadcast %cst_15 : f32 to vector<8x128xf32>
      %c0_16 = arith.constant 0 : index
      %c0_17 = arith.constant 0 : index
      %21 = vector.load %arg6[%c0_16, %c0_17] : memref<8x128xf32, #tpu.memory_space<vmem>>, vector<8x128xf32>
      tpu.vector_store %arg6[%c0_16, %c0_17], %20 {strides = array<i32>} : memref<8x128xf32, #tpu.memory_space<vmem>>, vector<8x128xf32>,
      %cst_18 = arith.constant 0.000000e+00 : f32
      %22 = vector.broadcast %cst_18 : f32 to vector<8x128xf32>
      %c0_19 = arith.constant 0 : index
      %c0_20 = arith.constant 0 : index
      %23 = vector.load %arg7[%c0_19, %c0_20] : memref<8x128xf32, #tpu.memory_space<vmem>>, vector<8x128xf32>
      tpu.vector_store %arg7[%c0_19, %c0_20], %22 {strides = array<i32>} : memref<8x128xf32, #tpu.memory_space<vmem>>, vector<8x128xf32>,
    } else {
    }
    %c0 = arith.constant 0 : index
    %c0_1 = arith.constant 0 : index
    %3 = vector.load %arg2[%c0, %c0_1] : memref<16x128xf32, #tpu.memory_space<vmem>>, vector<16x128xf32>
    %c0_2 = arith.constant 0 : index
    %c0_3 = arith.constant 0 : index
    %4 = vector.load %arg3[%c0_2, %c0_3] : memref<16x128xf32, #tpu.memory_space<vmem>>, vector<16x128xf32>
    %c0_4 = arith.constant 0 : index
    %c0_5 = arith.constant 0 : index
    %5 = vector.load %arg6[%c0_4, %c0_5] : memref<8x128xf32, #tpu.memory_space<vmem>>, vector<8x128xf32>
    %6 = arith.mulf %3, %4 : vector<16x128xf32>
    %7 = vector.shape_cast %6 : vector<16x128xf32> to vector<2x8x128xf32>
    %cst = arith.constant dense<0.000000e+00> : vector<8x128xf32>
    %8 = vector.multi_reduction <add>, %7, %cst [0] : vector<2x8x128xf32> to vector<8x128xf32>
    %9 = arith.addf %5, %8 : vector<8x128xf32>
    %c0_6 = arith.constant 0 : index
    %c0_7 = arith.constant 0 : index
    %10 = vector.load %arg6[%c0_6, %c0_7] : memref<8x128xf32, #tpu.memory_space<vmem>>, vector<8x128xf32>
    tpu.vector_store %arg6[%c0_6, %c0_7], %9 {strides = array<i32>} : memref<8x128xf32, #tpu.memory_space<vmem>>, vector<8x128xf32>,
    %c0_8 = arith.constant 0 : index
    %c0_9 = arith.constant 0 : index
    %11 = vector.load %arg7[%c0_8, %c0_9] : memref<8x128xf32, #tpu.memory_space<vmem>>, vector<8x128xf32>
    %12 = arith.addf %3, %4 : vector<16x128xf32>
    %13 = vector.shape_cast %12 : vector<16x128xf32> to vector<2x8x128xf32>
    %cst_10 = arith.constant dense<0.000000e+00> : vector<8x128xf32>
    %14 = vector.multi_reduction <add>, %13, %cst_10 [0] : vector<2x8x128xf32> to vector<8x128xf32>
    %15 = arith.addf %11, %14 : vector<8x128xf32>
    %c0_11 = arith.constant 0 : index
    %c0_12 = arith.constant 0 : index
    %16 = vector.load %arg7[%c0_11, %c0_12] : memref<8x128xf32, #tpu.memory_space<vmem>>, vector<8x128xf32>
    tpu.vector_store %arg7[%c0_11, %c0_12], %15 {strides = array<i32>} : memref<8x128xf32, #tpu.memory_space<vmem>>, vector<8x128xf32>,
    %c0_i32_13 = arith.constant 0 : i32
    %17 = arith.cmpi eq, %arg1, %c0_i32_13 : i32
    %18 = arith.extui %17 : i1 to i32
    %c0_i32_14 = arith.constant 0 : i32
    %19 = arith.cmpi ne, %18, %c0_i32_14 : i32
    scf.if %19 {
      %c0_15 = arith.constant 0 : index
      %c0_16 = arith.constant 0 : index
      %20 = vector.load %arg6[%c0_15, %c0_16] : memref<8x128xf32, #tpu.memory_space<vmem>>, vector<8x128xf32>
      %21 = vector.shape_cast %20 : vector<8x128xf32> to vector<1x8x128xf32>
      %cst_17 = arith.constant dense<0.000000e+00> : vector<1xf32>
      %22 = vector.multi_reduction <add>, %21, %cst_17 [1, 2] : vector<1x8x128xf32> to vector<1xf32>
      %23 = vector.shape_cast %22 : vector<1xf32> to vector<1x1x1xf32>
      %24 = vector.extract %23[0, 0, 0] : f32 from vector<1x1x1xf32>
      %25 = vector.broadcast %24 : f32 to vector<1x1x1xf32>
      %c0_18 = arith.constant 0 : index
      %c0_19 = arith.constant 0 : index
      %c0_20 = arith.constant 0 : index
      %26 = vector.load %arg4[%c0_18, %c0_19, %c0_20] : memref<1x1x1xf32, #tpu.memory_space<vmem>>, vector<1x1x1xf32>
      tpu.vector_store %arg4[%c0_18, %c0_19, %c0_20], %25 {strides = array<i32>} : memref<1x1x1xf32, #tpu.memory_space<vmem>>, vector<1x1x1xf32>,
      %c0_21 = arith.constant 0 : index
      %c0_22 = arith.constant 0 : index
      %27 = vector.load %arg7[%c0_21, %c0_22] : memref<8x128xf32, #tpu.memory_space<vmem>>, vector<8x128xf32>
      %28 = vector.shape_cast %27 : vector<8x128xf32> to vector<1x8x128xf32>
      %cst_23 = arith.constant dense<0.000000e+00> : vector<1xf32>
      %29 = vector.multi_reduction <add>, %28, %cst_23 [1, 2] : vector<1x8x128xf32> to vector<1xf32>
      %30 = vector.shape_cast %29 : vector<1xf32> to vector<1x1x1xf32>
      %31 = vector.extract %30[0, 0, 0] : f32 from vector<1x1x1xf32>
      %32 = vector.broadcast %31 : f32 to vector<1x1x1xf32>
      %c0_24 = arith.constant 0 : index
      %c0_25 = arith.constant 0 : index
      %c0_26 = arith.constant 0 : index
      %33 = vector.load %arg5[%c0_24, %c0_25, %c0_26] : memref<1x1x1xf32, #tpu.memory_space<vmem>>, vector<1x1x1xf32>
      tpu.vector_store %arg5[%c0_24, %c0_25, %c0_26], %32 {strides = array<i32>} : memref<1x1x1xf32, #tpu.memory_space<vmem>>, vector<1x1x1xf32>,
    } else {
    }
    return
  }
  func.func @transform_0(%arg0: i32, %arg1: i32) -> (i32, i32) {
    %c1_i32 = arith.constant 1 : i32
    %0 = arith.muli %arg0, %c1_i32 : i32
    %1 = arith.addi %0, %arg1 : i32
    %c0_i32 = arith.constant 0 : i32
    %2 = arith.minsi %1, %c0_i32 : i32
    %c0_i32_0 = arith.constant 0 : i32
    %c0_i32_1 = arith.constant 0 : i32
    return %2, %c0_i32_0 : i32, i32
  }
  func.func @transform_1(%arg0: i32, %arg1: i32) -> (i32, i32) {
    %c1_i32 = arith.constant 1 : i32
    %0 = arith.muli %arg0, %c1_i32 : i32
    %1 = arith.addi %0, %arg1 : i32
    %c0_i32 = arith.constant 0 : i32
    %2 = arith.minsi %1, %c0_i32 : i32
    %c0_i32_0 = arith.constant 0 : i32
    %c0_i32_1 = arith.constant 0 : i32
    return %2, %c0_i32_0 : i32, i32
  }
  func.func @transform_2(%arg0: i32, %arg1: i32) -> (i32, i32, i32) {
    %c0_i32 = arith.constant 0 : i32
    %c0_i32_0 = arith.constant 0 : i32
    %c0_i32_1 = arith.constant 0 : i32
    return %arg0, %c0_i32, %c0_i32_0 : i32, i32, i32
  }
  func.func @transform_3(%arg0: i32, %arg1: i32) -> (i32, i32, i32) {
    %c0_i32 = arith.constant 0 : i32
    %c0_i32_0 = arith.constant 0 : i32
    %c0_i32_1 = arith.constant 0 : i32
    return %arg0, %c0_i32, %c0_i32_0 : i32, i32, i32
  }
}

</mosaic_0001>

<bundles_post_ra>
// kernel: iou_loss.1
= control target key start
LH: loop header
LB: loop body
LE: loop exit
PB: predicated region body
PF: predicated region fallthrough
CT: control target
= control target key end

     0   :  { %9 = vsyncpa [#allocation5], 0  ;;  %s261_s0 = inlined_call_operand.vmem [shape: f32[16,128], index: 0, kind: input, shape index: {}]   ;;  %s262_s1 = inlined_call_operand.vmem [shape: f32[16,128], index: 1, kind: input, shape index: {}]   ;;  %s263_s2 = inlined_call_operand.hbm [shape: f32[1,1,1], index: 2, kind: output, shape index: {0}]   ;;  %s264_s3 = inlined_call_operand.hbm [shape: f32[1,1,1], index: 3, kind: output, shape index: {1}]  }
   0x1   :  { %v85_v0 = vld [vmem:[%s261_s0] sm:$0xff]  ;;  %v86_v1 = vld [vmem:[%s261_s0 + $0x8] sm:$0xff] }
   0x2   :  { %v87_v2 = vld [vmem:[%s262_s1] sm:$0xff]  ;;  %v88_v3 = vld [vmem:[%s262_s1 + $0x8] sm:$0xff] }
   0x3   :  { %v90_v4 = vmul.f32 %v87_v2, %v85_v0 }
   0x4   :  { %10 = vsyncpa [#allocation7], 0  ;;  %v91_v5 = vmul.f32 %v88_v3, %v86_v1  ;;  %v96_v6 = vadd.f32 %v87_v2, %v85_v0  ;;  %v97_v7 = vadd.f32 %v88_v3, %v86_v1  ;;  %s219_s0 = smov [#allocation4]   ;;  %vm115_vm0 = vcmask 0   ;;  %s220_s21 = smov [#allocation6]  }
   0x5   :  { %s135_s1 = sshll.u32 %s219_s0, 4  ;;  %s145_s22 = sshll.u32 %s220_s21, 4  ;;  %s136_s1 = int_to_ptr.vmem [resolvable:$true] %s135_s1  ;;  %s146_s22 = int_to_ptr.vmem [resolvable:$true] %s145_s22 }
   0x6   :  { %v92_v8 = vadd.f32 %v91_v5, %v90_v4  ;;  %v98_v9 = vadd.f32 %v97_v7, %v96_v6  ;;  %s175_s23 = scalar_lea.vmem %s136_s1, 16  ;;  %s179_s24 = scalar_lea.vmem %s136_s1, 32 }
   0x7   :  { %p176_p0 = scmp.ne.s32.totalorder %s136_s1, %s175_s23  ;;  %p180_p1 = scmp.lt.s32.totalorder %s136_s1, %s136_s1 }
   0x8   :  { %105 = vadd.xlane.f32.xlu0 %v92_v8  ;;  %p181_p2 = scmp.lt.s32.totalorder %s179_s24, %s175_s23 }
   0xa   :  { %p182_p3 = por %p181_p2, %p180_p1 }
   0xc   :  { %118 = vadd.xlane.f32.xlu0 %v98_v9  ;;  %p183_p4 = pnand %p182_p3, %p176_p0 }
  0x91   :  { %v106_v10 = vpop.xlane.xlu0 %105 }
  0x92   :  { %v107_v11 = vrot.slane %v106_v10, 4 }
  0x94   :  { %v108_v12 = vadd.f32 %v107_v11, %v106_v10 }
  0x95   :  { %v119_v13 = vpop.xlane.xlu0 %118 }
  0x96   :  { %v109_v14 = vrot.slane %v108_v12, 2  ;;  %v120_v15 = vrot.slane %v119_v13, 4 }
  0x98   :  { %v121_v16 = vadd.f32 %v120_v15, %v119_v13  ;;  %v110_v17 = vadd.f32 %v109_v14, %v108_v12 }
  0x9a   :  { %v122_v18 = vrot.slane %v121_v16, 2  ;;  %v111_v19 = vrot.slane %v110_v17, 1 }
  0x9c   :  { %v123_v20 = vadd.f32 %v122_v18, %v121_v16  ;;  %v112_v21 = vadd.f32 %v111_v19, %v110_v17 }
  0x9e   :  { %169 = vpush %v112_v21  ;;  %v124_v22 = vrot.slane %v123_v20, 1 }
  0xa0   :  { %v125_v23 = vadd.f32 %v124_v22, %v123_v20 }
  0xa2   :  { %171 = vpush %v125_v23 }
  0xcf   :  { %s170_s20 = spop %169 }
  0xd0   :  { %v114_v24 = vstv %s170_s20 }
  0xd1   :  { %116 = vst.msk [vmem:[#allocation4] sm:$0x1] %vm115_vm0, %v114_v24 }
  0xd2   :  { %186 = shalt.err (!%p183_p4)
}
  0xd3   :  { %138 = dma.vmem_to_hbm [thread:$0]  %s136_s1, 16, %s263_s2, [#allocation5]  }
  0xd4   :  { %s172_s27 = spop %171  ;;  %s195_s28 = scalar_lea.vmem %s146_s22, 16 }
  0xd5   :  { %v127_v25 = vstv %s172_s27  ;;  %p196_p5 = scmp.ne.s32.totalorder %s146_s22, %s195_s28  ;;  %s199_s29 = scalar_lea.vmem %s146_s22, 32 }
  0xd6   :  { %128 = vst.msk [vmem:[#allocation6] sm:$0x1] %vm115_vm0, %v127_v25  ;;  %p200_p6 = scmp.lt.s32.totalorder %s146_s22, %s146_s22  ;;  %p201_p7 = scmp.lt.s32.totalorder %s199_s29, %s195_s28 }
  0xd8   :  { %p202_p8 = por %p201_p7, %p200_p6 }
  0xda   :  { %p203_p9 = pnand %p202_p8, %p196_p5 }
  0xdc   :  { %206 = shalt.err (!%p203_p9)
}
  0xdd   :  { %148 = dma.vmem_to_hbm [thread:$0]  %s146_s22, 16, %s264_s3, [#allocation7]  }
  0xde   :  { %215 = dma.done.wait [#allocation5], 16  }
  0xdf   :  { %216 = vsyncadd [#allocation5], 4294967280 }
  0xe0   :  { %217 = dma.done.wait [#allocation7], 16  }
  0xe1   :  { %218 = vsyncadd [#allocation7], 4294967280 }
  0xe2   :  { %155 = vsyncpa [#allocation5], 1 }
  0xe3   :  { %156 = vsyncpa [#allocation7], 1 }

</bundles_post_ra>
